<compile_context>
chip_gen: v7x
topology: tpu7x:2x2x1
jax: 0.10.0
libtpu: 0.0.40
codegen_flags: <defaults>
</compile_context>

<pallas_src>
import jax
import jax.numpy as jnp
from jax.experimental import pallas as pl
from jax.experimental.pallas import tpu as pltpu


def _round_up(x, m):
    return (x + m - 1) // m * m


def _cdiv(a, b):
    return (a + b - 1) // b


def _classifier_kernel(x_ref, v1_ref, b1_ref, v2_ref, b2_ref, o_ref):
    # ---- layer 1: weight-normed linear (scale pre-folded into v1) + ReLU ----
    h = jnp.dot(x_ref[...], v1_ref[...], preferred_element_type=jnp.float32)
    h = jnp.maximum(h + b1_ref[...], 0.0)            # (TB, hid_p)

    # Dropout(p, inplace=True): identity at inference time.
    # TODO(synk): training-mode dropout (pltpu.prng_* masking) not implemented.

    # ---- layer 2: weight-normed linear (scale pre-folded into v2) ----
    y = jnp.dot(h, v2_ref[...], preferred_element_type=jnp.float32)
    o_ref[...] = (y + b2_ref[...]).astype(o_ref.dtype)   # (TB, out_dim)


def simple_classifier(x, v1, g1, b1, v2, g2, b2, *, block_b=2048,
                      min_pallas_batch=512):
    """x: (B, in_dim) f32. v1:(in,hid), v2:(hid,out) pre-transposed weights;
    g1/g2 scalar (1,1); b1:(1,hid), b2:(1,out). Returns (B, out_dim) f32."""
    x = x.astype(jnp.float32)
    B, in_dim = x.shape
    hid_dim = v1.shape[1]
    out_dim = v2.shape[1]

    # Weight-norm scalars (weight_norm(dim=None): Frobenius norm over the whole
    # matrix), computed once and folded into the weights below.
    s1 = g1.reshape(()).astype(jnp.float32) * jax.lax.rsqrt(
        jnp.sum(v1.astype(jnp.float32) ** 2))
    s2 = g2.reshape(()).astype(jnp.float32) * jax.lax.rsqrt(
        jnp.sum(v2.astype(jnp.float32) ** 2))

    # Small-batch fallback: a fused XLA dot beats pallas_call launch overhead.
    if B < min_pallas_batch:
        h = jnp.maximum(x @ (v1.astype(jnp.float32) * s1)
                        + b1.reshape(1, hid_dim).astype(jnp.float32), 0.0)
        return h @ (v2.astype(jnp.float32) * s2) \
            + b2.reshape(1, out_dim).astype(jnp.float32)

    # Lane-dense padding of the *hidden* dim only (intermediate stays in VMEM).
    # Exact: padded h columns are 0 before/after ReLU, padded v2 rows add 0.
    hid_p = _round_up(hid_dim, 128)
    v1p = jnp.zeros((in_dim, hid_p), jnp.float32).at[:, :hid_dim].set(
        v1.astype(jnp.float32) * s1)
    b1p = jnp.zeros((1, hid_p), jnp.float32).at[:, :hid_dim].set(
        b1.reshape(1, hid_dim))
    v2p = jnp.zeros((hid_p, out_dim), jnp.float32).at[:hid_dim, :].set(
        v2.astype(jnp.float32) * s2)
    b2p = b2.reshape(1, out_dim).astype(jnp.float32)

    # Batch tile: multiple of 8, large (amortize ~0.35us/step overhead), but
    # capped so the grid still has >= 2 steps (v7x has 2 TensorCores).
    TB = min(block_b, _round_up(_cdiv(B, 2), 8))
    TB = max(8, _round_up(TB, 8))
    grid = (_cdiv(B, TB),)

    in_specs = [
        pl.BlockSpec((TB, in_dim), lambda i: (i, 0)),      # x tile (pipelined)
        pl.BlockSpec((in_dim, hid_p), lambda i: (0, 0)),   # v1*s1 (resident)
        pl.BlockSpec((1, hid_p), lambda i: (0, 0)),        # b1 (resident)
        pl.BlockSpec((hid_p, out_dim), lambda i: (0, 0)),  # v2*s2 (resident)
        pl.BlockSpec((1, out_dim), lambda i: (0, 0)),      # b2 (resident)
    ]
    out_specs = pl.BlockSpec((TB, out_dim), lambda i: (i, 0))

    # VMEM budget: double-buffered x / out tiles, single intermediate temp,
    # (default double-buffered) resident weights; 2x headroom, <= 48 MiB
    # (safe on v7x 64 MiB physical; tiny shapes never reach the cap anyway).
    vmem_needed = 4 * (2 * TB * in_dim          # x (double-buffered)
                       + 2 * TB * out_dim       # out (double-buffered)
                       + TB * hid_p             # intermediate h (kernel temp)
                       + 2 * (in_dim * hid_p + hid_p
                              + hid_p * out_dim + out_dim))
    vmem_limit = int(min(max(2 * vmem_needed, 16 << 20), 48 << 20))

    out = pl.pallas_call(
        _classifier_kernel,
        out_shape=jax.ShapeDtypeStruct((B, out_dim), jnp.float32),
        grid=grid,
        in_specs=in_specs,
        out_specs=out_specs,
        compiler_params=pltpu.CompilerParams(
            dimension_semantics=("parallel",),
            vmem_limit_bytes=vmem_limit,
        ),
    )(x, v1p, b1p, v2p, b2p)

    return out


def simple_classifier_ref(x, v1, g1, b1, v2, g2, b2):
    """Pure-JAX reference matching PyTorch semantics (eval mode)."""
    w1 = g1.reshape(()) * v1 / jnp.sqrt(jnp.sum(v1 * v1))
    h = jnp.maximum(x @ w1 + b1.reshape(1, -1), 0.0)
    w2 = g2.reshape(()) * v2 / jnp.sqrt(jnp.sum(v2 * v2))
    return h @ w2 + b2.reshape(1, -1)


if __name__ == "__main__":
    # SimpleClassifier(32, 64, 16, 0.5); small feature dims, batch big enough
    # (and not a multiple of the tile) to exercise the Pallas path + boundary
    # masking, plus a tiny-batch check of the fallback path.
    in_dim, hid_dim, out_dim = 32, 64, 16

    key = jax.random.PRNGKey(0)
    k1, k2, k3, k4, k5 = jax.random.split(key, 5)

    # nn.Linear weights are (out, in); pre-transposed to (in, out) for the kernel.
    v1 = jax.random.normal(k2, (in_dim, hid_dim), dtype=jnp.float32) * 0.1
    b1 = jax.random.normal(k3, (1, hid_dim), dtype=jnp.float32) * 0.1
    v2 = jax.random.normal(k4, (hid_dim, out_dim), dtype=jnp.float32) * 0.1
    b2 = jax.random.normal(k5, (1, out_dim), dtype=jnp.float32) * 0.1

    # weight_norm(dim=None) initializes g = ||v||_F (scalar); keep it explicit.
    g1 = jnp.sqrt(jnp.sum(v1 * v1)).reshape(1, 1)
    g2 = jnp.sqrt(jnp.sum(v2 * v2)).reshape(1, 1)

    # --- Pallas path (B > min_pallas_batch, non-divisible boundary tile) ---
    B = 777
    x = jax.random.normal(k1, (B, in_dim), dtype=jnp.float32)
    out = simple_classifier(x, v1, g1, b1, v2, g2, b2)
    out = jax.block_until_ready(out)
    ref = simple_classifier_ref(x, v1, g1, b1, v2, g2, b2)
    assert out.shape == (B, out_dim)
    assert jnp.allclose(out, ref, atol=1e-4, rtol=1e-4), "pallas path mismatch"

    # --- tiny-batch fallback path ---
    Bs = 8
    xs = jax.random.normal(k1, (Bs, in_dim), dtype=jnp.float32)
    outs = jax.block_until_ready(simple_classifier(xs, v1, g1, b1, v2, g2, b2))
    refs = simple_classifier_ref(xs, v1, g1, b1, v2, g2, b2)
    assert outs.shape == (Bs, out_dim)
    assert jnp.allclose(outs, refs, atol=1e-4, rtol=1e-4), "fallback mismatch"

    print("KERNEL_OK")
</pallas_src>

<mosaic_0001>
module attributes {stable_mosaic.version = 11 : i64} {
  func.func @_classifier_kernel(%arg0: i32, %arg1: memref<392x32xf32, #tpu.memory_space<vmem>>, %arg2: memref<32x128xf32, #tpu.memory_space<vmem>>, %arg3: memref<1x128xf32, #tpu.memory_space<vmem>>, %arg4: memref<128x16xf32, #tpu.memory_space<vmem>>, %arg5: memref<1x16xf32, #tpu.memory_space<vmem>>, %arg6: memref<392x16xf32, #tpu.memory_space<vmem>>) attributes {dimension_semantics = [#tpu.dimension_semantics<parallel>], iteration_bounds = array<i64: 2>, scalar_prefetch = 0 : i64, scratch_operands = 0 : i64, tpu.core_type = #tpu.core_type<tc>, window_params = [{transform_indices = @transform_0, window_bounds = array<i64: 392, 32>}, {pipeline_mode = #tpu.pipeline_mode<synchronous>, transform_indices = @transform_1, window_bounds = array<i64: 32, 128>}, {pipeline_mode = #tpu.pipeline_mode<synchronous>, transform_indices = @transform_2, window_bounds = array<i64: 1, 128>}, {pipeline_mode = #tpu.pipeline_mode<synchronous>, transform_indices = @transform_3, window_bounds = array<i64: 128, 16>}, {pipeline_mode = #tpu.pipeline_mode<synchronous>, transform_indices = @transform_4, window_bounds = array<i64: 1, 16>}, {transform_indices = @transform_5, window_bounds = array<i64: 392, 16>}]} {
    %c0 = arith.constant 0 : index
    %c0_0 = arith.constant 0 : index
    %0 = vector.load %arg1[%c0, %c0_0] : memref<392x32xf32, #tpu.memory_space<vmem>>, vector<392x32xf32>
    %c0_1 = arith.constant 0 : index
    %c0_2 = arith.constant 0 : index
    %1 = vector.load %arg2[%c0_1, %c0_2] : memref<32x128xf32, #tpu.memory_space<vmem>>, vector<32x128xf32>
    %cst = arith.constant dense<0.000000e+00> : vector<392x128xf32>
    %2 = tpu.matmul %0, %1, %cst {dimension_numbers = #tpu.dot_dimension_numbers<[1], [0], [0], [1], [0, 0, 1, 1], [], []>} : vector<392x32xf32>, vector<32x128xf32>, vector<392x128xf32> -> vector<392x128xf32>
    %c0_3 = arith.constant 0 : index
    %c0_4 = arith.constant 0 : index
    %3 = vector.load %arg3[%c0_3, %c0_4] : memref<1x128xf32, #tpu.memory_space<vmem>>, vector<1x128xf32>
    %4 = vector.broadcast %3 : vector<1x128xf32> to vector<392x128xf32>
    %5 = arith.addf %2, %4 : vector<392x128xf32>
    %cst_5 = arith.constant 0.000000e+00 : f32
    %6 = vector.broadcast %cst_5 : f32 to vector<392x128xf32>
    %7 = arith.maximumf %5, %6 : vector<392x128xf32>
    %c0_6 = arith.constant 0 : index
    %c0_7 = arith.constant 0 : index
    %8 = vector.load %arg4[%c0_6, %c0_7] : memref<128x16xf32, #tpu.memory_space<vmem>>, vector<128x16xf32>
    %cst_8 = arith.constant dense<0.000000e+00> : vector<392x16xf32>
    %9 = tpu.matmul %7, %8, %cst_8 {dimension_numbers = #tpu.dot_dimension_numbers<[1], [0], [0], [1], [0, 0, 1, 1], [], []>} : vector<392x128xf32>, vector<128x16xf32>, vector<392x16xf32> -> vector<392x16xf32>
    %c0_9 = arith.constant 0 : index
    %c0_10 = arith.constant 0 : index
    %10 = vector.load %arg5[%c0_9, %c0_10] : memref<1x16xf32, #tpu.memory_space<vmem>>, vector<1x16xf32>
    %11 = vector.broadcast %10 : vector<1x16xf32> to vector<392x16xf32>
    %12 = arith.addf %9, %11 : vector<392x16xf32>
    %c0_11 = arith.constant 0 : index
    %c0_12 = arith.constant 0 : index
    %13 = vector.load %arg6[%c0_11, %c0_12] : memref<392x16xf32, #tpu.memory_space<vmem>>, vector<392x16xf32>
    tpu.vector_store %arg6[%c0_11, %c0_12], %12 {strides = array<i32>} : memref<392x16xf32, #tpu.memory_space<vmem>>, vector<392x16xf32>,
    return
  }
  func.func @transform_0(%arg0: i32) -> (i32, i32) {
    %c0_i32 = arith.constant 0 : i32
    %c0_i32_0 = arith.constant 0 : i32
    return %arg0, %c0_i32 : i32, i32
  }
  func.func @transform_1(%arg0: i32) -> (i32, i32) {
    %c0_i32 = arith.constant 0 : i32
    %c0_i32_0 = arith.constant 0 : i32
    %c0_i32_1 = arith.constant 0 : i32
    return %c0_i32, %c0_i32_0 : i32, i32
  }
  func.func @transform_2(%arg0: i32) -> (i32, i32) {
    %c0_i32 = arith.constant 0 : i32
    %c0_i32_0 = arith.constant 0 : i32
    %c0_i32_1 = arith.constant 0 : i32
    return %c0_i32, %c0_i32_0 : i32, i32
  }
  func.func @transform_3(%arg0: i32) -> (i32, i32) {
    %c0_i32 = arith.constant 0 : i32
    %c0_i32_0 = arith.constant 0 : i32
    %c0_i32_1 = arith.constant 0 : i32
    return %c0_i32, %c0_i32_0 : i32, i32
  }
  func.func @transform_4(%arg0: i32) -> (i32, i32) {
    %c0_i32 = arith.constant 0 : i32
    %c0_i32_0 = arith.constant 0 : i32
    %c0_i32_1 = arith.constant 0 : i32
    return %c0_i32, %c0_i32_0 : i32, i32
  }
  func.func @transform_5(%arg0: i32) -> (i32, i32) {
    %c0_i32 = arith.constant 0 : i32
    %c0_i32_0 = arith.constant 0 : i32
    return %arg0, %c0_i32 : i32, i32
  }
}

</mosaic_0001>

<bundles_post_ra>
// kernel: tpu_custom_call.1
= control target key start
LH: loop header
LB: loop body
LE: loop exit
PB: predicated region body
PF: predicated region fallthrough
CT: control target
= control target key end

     0   :  { %s1844_s18 = smov 0   ;;  %s2450_s0 = inlined_call_operand.vmem [shape: f32[777,32], index: 0, kind: input, shape index: {}]   ;;  %s2451_s1 = inlined_call_operand.vmem [shape: f32[32,128], index: 1, kind: input, shape index: {}]   ;;  %s2452_s2 = inlined_call_operand.vmem [shape: f32[1,128], index: 2, kind: input, shape index: {}]   ;;  %s2453_s3 = inlined_call_operand.vmem [shape: f32[128,16], index: 3, kind: input, shape index: {}]   ;;  %s2454_s4 = inlined_call_operand.vmem [shape: f32[1,16], index: 4, kind: input, shape index: {}]   ;;  %s2455_s5 = inlined_call_operand.vmem [shape: f32[777,16], index: 5, kind: output, shape index: {}]  }
   0x1 LB: > { %s1234_s19 = sadd.s32 4294967295, %s1809_s18   ;;  %p1238_p0 = scmp.ge.s32.totalorder %s1809_s18, 1  ;;  %s1809_s18 = sphi %s1844_s18, %s15_s18  }
   0x2   : > { %p188_p1 = scmp.lt.s32.totalorder %s1809_s18, 3 }
   0x4   : > { %p189_p2 = pnand %p1238_p0, %p188_p1 }
   0x5   : > { %v277_v0 = vld [vmem:[%s2451_s1] sm:$0xff] (!%p189_p2)  ;;  %v278_v1 = vld [vmem:[%s2451_s1 + $0x8] sm:$0xff] (!%p189_p2)  ;;  %v279_v2 = vld [vmem:[%s2451_s1 + $0x10] sm:$0xff] (!%p189_p2)  ;;  %v1811_v3 = vmov (!%p189_p2), 0.0|0.0   ;;  %vm1812_vm0 = vmmov (!%p189_p2), 0   ;;  %v1813_v6 = vmov (!%p189_p2), 0.0  }
   0x6   : > { %192 = sbr.rel (%p189_p2) target bundleno = 640 (0x280), region = 40  ;;  %1746 = vmatprep.subr.bf16.mxu0 (!%p189_p2), %v1811_v3  ;;  %v1747_v4 = vpack.c.bf16 (!%p189_p2), %v278_v1, %v277_v0  ;;  %v280_v5 = vld [vmem:[%s2451_s1 + $0x18] sm:$0xff] (!%p189_p2)  ;;  %1420 = vmatprep.mubr.msk.f32.mxu0 (!%p189_p2), %vm1812_vm0, %v1813_v6  ;;  %vm288_vm1 = vcmask (!%p189_p2), 261120   ;;  %v795_v23 = vld [vmem:[%s2453_s3] sm:$0xff] (!%p189_p2)  ;;  %v796_v24 = vld [vmem:[%s2453_s3 + $0x8] sm:$0xff] (!%p189_p2)  ;;  %vm1128_vm2 = vcmask (!%p189_p2), 130048  }
   0x7   : > { %s216_s28 = smul.u32 (!%p189_p2), 49, %s1234_s19  ;;  %1776 = vmatprep.subr.bf16.mxu1 (!%p189_p2), %v1811_v3  ;;  %1608 = vmatprep.mubr.msk.f32.mxu1 (!%p189_p2), %vm1812_vm0, %v1813_v6  ;;  %v1750_v7 = vpack.c.bf16 (!%p189_p2), %v280_v5, %v279_v2  ;;  %v1753_v25 = vpack.c.bf16 (!%p189_p2), %v796_v24, %v795_v23  ;;  %v797_v27 = vld [vmem:[%s2453_s3 + $0x10] sm:$0xff] (!%p189_p2)  ;;  %v798_v28 = vld [vmem:[%s2453_s3 + $0x18] sm:$0xff] (!%p189_p2)  ;;  %v799_v31 = vld [vmem:[%s2453_s3 + $0x20] sm:$0xff] (!%p189_p2) }
   0x8   : > { %1748 = vmatpush3.bf16.msra.mxu0 (!%p189_p2), %v1747_v4  ;;  %v1756_v29 = vpack.c.bf16 (!%p189_p2), %v798_v28, %v797_v27  ;;  %v800_v32 = vld [vmem:[%s2453_s3 + $0x28] sm:$0xff] (!%p189_p2)  ;;  %v801_v34 = vld [vmem:[%s2453_s3 + $0x30] sm:$0xff] (!%p189_p2)  ;;  %v802_v35 = vld [vmem:[%s2453_s3 + $0x38] sm:$0xff] (!%p189_p2) }
   0x9   : > { %p217_p3 = scmp.lt.s32.totalorder (!%p189_p2), %s216_s28, 97  ;;  %1749 = vmatprep.subr.bf16.mxu0 (!%p189_p2), %v1811_v3  ;;  %1784 = vmatpush3.bf16.msra.mxu1 (!%p189_p2), %v1753_v25  ;;  %v1759_v33 = vpack.c.bf16 (!%p189_p2), %v800_v32, %v799_v31  ;;  %v1762_v37 = vpack.c.bf16 (!%p189_p2), %v802_v35, %v801_v34  ;;  %v803_v38 = vld [vmem:[%s2453_s3 + $0x40] sm:$0xff] (!%p189_p2)  ;;  %v804_v39 = vld [vmem:[%s2453_s3 + $0x48] sm:$0xff] (!%p189_p2)  ;;  %v805_v42 = vld [vmem:[%s2453_s3 + $0x50] sm:$0xff] (!%p189_p2) }
   0xa   : > { %1777 = vmatprep.subr.bf16.mxu1 (!%p189_p2), %v1811_v3  ;;  %v1765_v41 = vpack.c.bf16 (!%p189_p2), %v804_v39, %v803_v38  ;;  %v806_v43 = vld [vmem:[%s2453_s3 + $0x58] sm:$0xff] (!%p189_p2)  ;;  %v807_v46 = vld [vmem:[%s2453_s3 + $0x60] sm:$0xff] (!%p189_p2)  ;;  %v808_v47 = vld [vmem:[%s2453_s3 + $0x68] sm:$0xff] (!%p189_p2) }
   0xb   : > { %v1768_v45 = vpack.c.bf16 (!%p189_p2), %v806_v43, %v805_v42  ;;  %v1771_v49 = vpack.c.bf16 (!%p189_p2), %v808_v47, %v807_v46  ;;  %v809_v51 = vld [vmem:[%s2453_s3 + $0x70] sm:$0xff] (!%p189_p2)  ;;  %v810_v52 = vld [vmem:[%s2453_s3 + $0x78] sm:$0xff] (!%p189_p2) }
   0xc   : > { %1751 = vmatpush3.bf16.msra.mxu0 (!%p189_p2), %v1750_v7  ;;  %v1774_v53 = vpack.c.bf16 (!%p189_p2), %v810_v52, %v809_v51 }
   0xd   : > { %s2457_s28 = smov (!%p217_p3, %s216_s28), 97  ;;  %1752 = vmatprep.subr.bf16.mxu0 %v1811_v3  ;;  %1785 = vmatpush3.bf16.msra.mxu1 %v1756_v29 }
   0xe   : > { %s1239_s29 = sshll.u32 %s2457_s28, 3  ;;  %1778 = vmatprep.subr.bf16.mxu1 %v1811_v3 }
   0xf   : > { %s1879_s7 = scalar_lea.vmem %s2450_s0, %s1239_s29  ;;  %s2298_s25 = scalar_lea.vmem %s2455_s5, %s1239_s29 }
  0x10   : > { %v228_v8 = vld [vmem:[%s1879_s7] sm:$0xff]  ;;  %v229_v9 = vld [vmem:[%s1879_s7 + $0x8] sm:$0xff]  ;;  %v230_v10 = vld [vmem:[%s1879_s7 + $0x10] sm:$0xff] }
  0x11   : > { %1421 = vmatmul.mubr.msk.f32.vlgmr.msra.gmra.mrb[0].mxu0 %vm288_vm1, %v228_v8  ;;  %v231_v11 = vld [vmem:[%s1879_s7 + $0x18] sm:$0xff]  ;;  %v232_v12 = vld [vmem:[%s1879_s7 + $0x20] sm:$0xff]  ;;  %v233_v13 = vld [vmem:[%s1879_s7 + $0x28] sm:$0xff]  ;;  %1786 = vmatpush3.bf16.msra.mxu1 %v1759_v33 }
  0x12   : > { %1423 = vmatprep.mubr.msk.f32.mxu0 %vm1812_vm0, %v1813_v6  ;;  %v234_v14 = vld [vmem:[%s1879_s7 + $0x30] sm:$0xff]  ;;  %v235_v15 = vld [vmem:[%s1879_s7 + $0x38] sm:$0xff]  ;;  %v236_v16 = vld [vmem:[%s1879_s7 + $0x40] sm:$0xff]  ;;  %1754 = vmatpush3.bf16.msra.mxu0 %v1753_v25 }
  0x13   : > { %v237_v17 = vld [vmem:[%s1879_s7 + $0x48] sm:$0xff]  ;;  %v238_v18 = vld [vmem:[%s1879_s7 + $0x50] sm:$0xff]  ;;  %v239_v19 = vld [vmem:[%s1879_s7 + $0x58] sm:$0xff]  ;;  %1755 = vmatprep.subr.bf16.mxu0 %v1811_v3  ;;  %1779 = vmatprep.subr.bf16.mxu1 %v1811_v3 }
  0x14   : > { %v240_v20 = vld [vmem:[%s1879_s7 + $0x60] sm:$0xff]  ;;  %v241_v21 = vld [vmem:[%s1879_s7 + $0x68] sm:$0xff]  ;;  %v242_v22 = vld [vmem:[%s1879_s7 + $0x70] sm:$0xff] }
  0x15   : > { %1424 = vmatmul.mubr.msk.f32.gmra.mrb[2].mxu0 %vm288_vm1, %v229_v9  ;;  %v243_v26 = vld [vmem:[%s1879_s7 + $0x78] sm:$0xff]  ;;  %v244_v30 = vld [vmem:[%s1879_s7 + $0x80] sm:$0xff]  ;;  %v245_v36 = vld [vmem:[%s1879_s7 + $0x88] sm:$0xff]  ;;  %1787 = vmatpush3.bf16.msra.mxu1 %v1762_v37 }
  0x16   : > { %1426 = vmatprep.mubr.msk.f32.mxu0 %vm1812_vm0, %v1813_v6  ;;  %1757 = vmatpush3.bf16.msra.mxu0 %v1756_v29  ;;  %v246_v40 = vld [vmem:[%s1879_s7 + $0x90] sm:$0xff]  ;;  %v247_v44 = vld [vmem:[%s1879_s7 + $0x98] sm:$0xff]  ;;  %v248_v48 = vld [vmem:[%s1879_s7 + $0xa0] sm:$0xff] }
  0x17   : > { %1758 = vmatprep.subr.bf16.mxu0 %v1811_v3  ;;  %1780 = vmatprep.subr.bf16.mxu1 %v1811_v3  ;;  %v249_v50 = vld [vmem:[%s1879_s7 + $0xa8] sm:$0xff]  ;;  %v250_v54 = vld [vmem:[%s1879_s7 + $0xb0] sm:$0xff]  ;;  %v251_v55 = vld [vmem:[%s1879_s7 + $0xb8] sm:$0xff] }
  0x18   : > { %v252_v56 = vld [vmem:[%s1879_s7 + $0xc0] sm:$0xff]  ;;  %v253_v57 = vld [vmem:[%s1879_s7 + $0xc8] sm:$0xff]  ;;  %v254_v58 = vld [vmem:[%s1879_s7 + $0xd0] sm:$0xff] }
  0x19   : > { %1427 = vmatmul.mubr.msk.f32.gmra.mrb[4].mxu0 %vm288_vm1, %v230_v10  ;;  %1788 = vmatpush3.bf16.msra.mxu1 %v1765_v41  ;;  %v255_v59 = vld [vmem:[%s1879_s7 + $0xd8] sm:$0xff]  ;;  %v256_v60 = vld [vmem:[%s1879_s7 + $0xe0] sm:$0xff]  ;;  %v257_v61 = vld [vmem:[%s1879_s7 + $0xe8] sm:$0xff] }
  0x1a   : > { %1429 = vmatprep.mubr.msk.f32.mxu0 %vm1812_vm0, %v1813_v6  ;;  %1760 = vmatpush3.bf16.msra.mxu0 %v1759_v33  ;;  %v258_v62 = vld [vmem:[%s1879_s7 + $0xf0] sm:$0xff]  ;;  %v259_v63 = vld [vmem:[%s1879_s7 + $0xf8] sm:$0xff]  ;;  %v260_v0 = vld [vmem:[%s1879_s7 + $0x100] sm:$0xff] }
  0x1b   : > { %1761 = vmatprep.subr.bf16.mxu0 %v1811_v3  ;;  %1781 = vmatprep.subr.bf16.mxu1 %v1811_v3  ;;  %v261_v1 = vld [vmem:[%s1879_s7 + $0x108] sm:$0xff]  ;;  %v262_v2 = vld [vmem:[%s1879_s7 + $0x110] sm:$0xff]  ;;  %v264_v4 = vld [vmem:[%s1879_s7 + $0x120] sm:$0xff] }
  0x1c   : > { %v265_v5 = vld [vmem:[%s1879_s7 + $0x128] sm:$0xff]  ;;  %v266_v7 = vld [vmem:[%s1879_s7 + $0x130] sm:$0xff]  ;;  %v267_v8 = vld [vmem:[%s1879_s7 + $0x138] sm:$0xff] }
  0x1d   : > { %1430 = vmatmul.mubr.msk.f32.gmra.mrb[6].mxu0 %vm288_vm1, %v231_v11  ;;  %1789 = vmatpush3.bf16.msra.mxu1 %v1768_v45  ;;  %v268_v9 = vld [vmem:[%s1879_s7 + $0x140] sm:$0xff]  ;;  %v269_v10 = vld [vmem:[%s1879_s7 + $0x148] sm:$0xff]  ;;  %v270_v11 = vld [vmem:[%s1879_s7 + $0x150] sm:$0xff] }
  0x1e   : > { %1432 = vmatprep.mubr.msk.f32.mxu0 %vm1812_vm0, %v1813_v6  ;;  %1763 = vmatpush3.bf16.msra.mxu0 %v1762_v37 }
  0x1f   : > { %1764 = vmatprep.subr.bf16.mxu0 %v1811_v3  ;;  %1782 = vmatprep.subr.bf16.mxu1 %v1811_v3 }
  0x21   : > { %1433 = vmatmul.mubr.msk.f32.gmra.mrb[8].mxu0 %vm288_vm1, %v232_v12  ;;  %1790 = vmatpush3.bf16.msra.mxu1 %v1771_v49  ;;  %v271_v12 = vld [vmem:[%s1879_s7 + $0x158] sm:$0xff] }
  0x22   : > { %1435 = vmatprep.mubr.msk.f32.mxu0 %vm1812_vm0, %v1813_v6  ;;  %1766 = vmatpush3.bf16.msra.mxu0 %v1765_v41 }
  0x23   : > { %1767 = vmatprep.subr.bf16.mxu0 %v1811_v3  ;;  %1783 = vmatprep.subr.bf16.mxu1 %v1811_v3 }
  0x25   : > { %1436 = vmatmul.mubr.msk.f32.gmra.mrb[10].mxu0 %vm288_vm1, %v233_v13  ;;  %1791 = vmatpush3.bf16.msra.mxu1 %v1774_v53  ;;  %v272_v13 = vld [vmem:[%s1879_s7 + $0x160] sm:$0xff] }
  0x26   : > { %1438 = vmatprep.mubr.msk.f32.mxu0 %vm1812_vm0, %v1813_v6  ;;  %1769 = vmatpush3.bf16.msra.mxu0 %v1768_v45 }
  0x27   : > { %1770 = vmatprep.subr.bf16.mxu0 %v1811_v3 }
  0x29   : > { %1439 = vmatmul.mubr.msk.f32.gmra.mrb[12].mxu0 %vm288_vm1, %v234_v14  ;;  %v273_v14 = vld [vmem:[%s1879_s7 + $0x168] sm:$0xff] }
  0x2a   : > { %1441 = vmatprep.mubr.msk.f32.mxu0 %vm1812_vm0, %v1813_v6  ;;  %1772 = vmatpush3.bf16.msra.mxu0 %v1771_v49 }
  0x2b   : > { %1773 = vmatprep.subr.bf16.mxu0 %v1811_v3  ;;  %v263_v3 = vld [vmem:[%s1879_s7 + $0x118] sm:$0xff] }
  0x2d   : > { %1442 = vmatmul.mubr.msk.f32.gmra.mrb[14].mxu0 %vm288_vm1, %v235_v15  ;;  %v274_v15 = vld [vmem:[%s1879_s7 + $0x170] sm:$0xff] }
  0x2e   : > { %1444 = vmatprep.mubr.msk.f32.mxu0 %vm1812_vm0, %v1813_v6  ;;  %1775 = vmatpush3.bf16.msra.mxu0 %v1774_v53 }
  0x31   : > { %1445 = vmatmul.mubr.msk.f32.gmra.mrb[16].mxu0 %vm288_vm1, %v236_v16  ;;  %v275_v16 = vld [vmem:[%s1879_s7 + $0x178] sm:$0xff] }
  0x32   : > { %1447 = vmatprep.mubr.msk.f32.mxu0 %vm1812_vm0, %v1813_v6 }
  0x35   : > { %1448 = vmatmul.mubr.msk.f32.gmra.mrb[18].mxu0 %vm288_vm1, %v237_v17  ;;  %v276_v17 = vld [vmem:[%s1879_s7 + $0x180] sm:$0xff] }
  0x36   : > { %1450 = vmatprep.mubr.msk.f32.mxu0 %vm1812_vm0, %v1813_v6 }
  0x39   : > { %1451 = vmatmul.mubr.msk.f32.gmra.mrb[20].mxu0 %vm288_vm1, %v238_v18  ;;  %v2143_v18 = vld [vmem:[%s2452_s2] ss:$0 sm:$0xff] }
  0x3a   : > { %1453 = vmatprep.mubr.msk.f32.mxu0 %vm1812_vm0, %v1813_v6 }
  0x3d   : > { %1454 = vmatmul.mubr.msk.f32.gmra.mrb[22].mxu0 %vm288_vm1, %v239_v19 }
  0x3e   : > { %1456 = vmatprep.mubr.msk.f32.mxu0 %vm1812_vm0, %v1813_v6 }
  0x41   : > { %1457 = vmatmul.mubr.msk.f32.gmra.mrb[24].mxu0 %vm288_vm1, %v240_v20 }
  0x42   : > { %1459 = vmatprep.mubr.msk.f32.mxu0 %vm1812_vm0, %v1813_v6 }
  0x45   : > { %1460 = vmatmul.mubr.msk.f32.gmra.mrb[26].mxu0 %vm288_vm1, %v241_v21 }
  0x46   : > { %1462 = vmatprep.mubr.msk.f32.mxu0 %vm1812_vm0, %v1813_v6 }
  0x49   : > { %1463 = vmatmul.mubr.msk.f32.gmra.mrb[28].mxu0 %vm288_vm1, %v242_v22 }
  0x4a   : > { %1465 = vmatprep.mubr.msk.f32.mxu0 %vm1812_vm0, %v1813_v6 }
  0x4d   : > { %1466 = vmatmul.mubr.msk.f32.gmra.mrb[30].mxu0 %vm288_vm1, %v243_v26 }
  0x4e   : > { %1468 = vmatprep.mubr.msk.f32.mxu0 %vm1812_vm0, %v1813_v6 }
  0x51   : > { %1469 = vmatmul.mubr.msk.f32.gmra.mrb[32].mxu0 %vm288_vm1, %v244_v30 }
  0x52   : > { %1471 = vmatprep.mubr.msk.f32.mxu0 %vm1812_vm0, %v1813_v6 }
  0x55   : > { %1472 = vmatmul.mubr.msk.f32.gmra.mrb[34].mxu0 %vm288_vm1, %v245_v36 }
  0x56   : > { %1474 = vmatprep.mubr.msk.f32.mxu0 %vm1812_vm0, %v1813_v6 }
  0x59   : > { %1475 = vmatmul.mubr.msk.f32.gmra.mrb[36].mxu0 %vm288_vm1, %v246_v40 }
  0x5a   : > { %1477 = vmatprep.mubr.msk.f32.mxu0 %vm1812_vm0, %v1813_v6 }
  0x5d   : > { %1478 = vmatmul.mubr.msk.f32.gmra.mrb[38].mxu0 %vm288_vm1, %v247_v44 }
  0x5e   : > { %1480 = vmatprep.mubr.msk.f32.mxu0 %vm1812_vm0, %v1813_v6 }
  0x61   : > { %1481 = vmatmul.mubr.msk.f32.gmra.mrb[40].mxu0 %vm288_vm1, %v248_v48 }
  0x62   : > { %1483 = vmatprep.mubr.msk.f32.mxu0 %vm1812_vm0, %v1813_v6 }
  0x65   : > { %1484 = vmatmul.mubr.msk.f32.gmra.mrb[42].mxu0 %vm288_vm1, %v249_v50 }
  0x66   : > { %1486 = vmatprep.mubr.msk.f32.mxu0 %vm1812_vm0, %v1813_v6 }
  0x69   : > { %1487 = vmatmul.mubr.msk.f32.gmra.mrb[44].mxu0 %vm288_vm1, %v250_v54 }
  0x6a   : > { %1489 = vmatprep.mubr.msk.f32.mxu0 %vm1812_vm0, %v1813_v6 }
  0x6d   : > { %1490 = vmatmul.mubr.msk.f32.gmra.mrb[46].mxu0 %vm288_vm1, %v251_v55 }
  0x6e   : > { %1492 = vmatprep.mubr.msk.f32.mxu0 %vm1812_vm0, %v1813_v6 }
  0x71   : > { %1493 = vmatmul.mubr.msk.f32.gmra.mrb[48].mxu0 %vm288_vm1, %v252_v56 }
  0x72   : > { %1495 = vmatprep.mubr.msk.f32.mxu0 %vm1812_vm0, %v1813_v6 }
  0x75   : > { %1496 = vmatmul.mubr.msk.f32.gmra.mrb[50].mxu0 %vm288_vm1, %v253_v57 }
  0x76   : > { %1498 = vmatprep.mubr.msk.f32.mxu0 %vm1812_vm0, %v1813_v6 }
  0x79   : > { %1499 = vmatmul.mubr.msk.f32.gmra.mrb[52].mxu0 %vm288_vm1, %v254_v58 }
  0x7a   : > { %1501 = vmatprep.mubr.msk.f32.mxu0 %vm1812_vm0, %v1813_v6 }
  0x7d   : > { %1502 = vmatmul.mubr.msk.f32.gmra.mrb[54].mxu0 %vm288_vm1, %v255_v59 }
  0x7e   : > { %1504 = vmatprep.mubr.msk.f32.mxu0 %vm1812_vm0, %v1813_v6 }
  0x81   : > { %1505 = vmatmul.mubr.msk.f32.gmra.mrb[56].mxu0 %vm288_vm1, %v256_v60 }
  0x82   : > { %1507 = vmatprep.mubr.msk.f32.mxu0 %vm1812_vm0, %v1813_v6 }
  0x85   : > { %1508 = vmatmul.mubr.msk.f32.gmra.mrb[58].mxu0 %vm288_vm1, %v257_v61 }
  0x86   : > { %1510 = vmatprep.mubr.msk.f32.mxu0 %vm1812_vm0, %v1813_v6 }
  0x89   : > { %1511 = vmatmul.mubr.msk.f32.gmra.mrb[60].mxu0 %vm288_vm1, %v258_v62 }
  0x8a   : > { %1513 = vmatprep.mubr.msk.f32.mxu0 %vm1812_vm0, %v1813_v6 }
  0x8d   : > { %1514 = vmatmul.mubr.msk.f32.gmra.mrb[62].mxu0 %vm288_vm1, %v259_v63 }
  0x8e   : > { %1516 = vmatprep.mubr.msk.f32.mxu0 %vm1812_vm0, %v1813_v6 }
  0x91   : > { %1517 = vmatmul.mubr.msk.f32.gmra.mrb[64].mxu0 %vm288_vm1, %v260_v0 }
  0x92   : > { %1519 = vmatprep.mubr.msk.f32.mxu0 %vm1812_vm0, %v1813_v6 }
  0x95   : > { %1520 = vmatmul.mubr.msk.f32.gmra.mrb[66].mxu0 %vm288_vm1, %v261_v1 }
  0x96   : > { %1522 = vmatprep.mubr.msk.f32.mxu0 %vm1812_vm0, %v1813_v6 }
  0x99   : > { %1523 = vmatmul.mubr.msk.f32.gmra.mrb[68].mxu0 %vm288_vm1, %v262_v2 }
  0x9a   : > { %1525 = vmatprep.mubr.msk.f32.mxu0 %vm1812_vm0, %v1813_v6 }
  0x9d   : > { %1526 = vmatmul.mubr.msk.f32.gmra.mrb[70].mxu0 %vm288_vm1, %v263_v3 }
  0x9e   : > { %1528 = vmatprep.mubr.msk.f32.mxu0 %vm1812_vm0, %v1813_v6 }
  0xa1   : > { %1529 = vmatmul.mubr.msk.f32.gmra.mrb[72].mxu0 %vm288_vm1, %v264_v4 }
  0xa2   : > { %1531 = vmatprep.mubr.msk.f32.mxu0 %vm1812_vm0, %v1813_v6 }
  0xa5   : > { %1532 = vmatmul.mubr.msk.f32.gmra.mrb[74].mxu0 %vm288_vm1, %v265_v5 }
  0xa6   : > { %1534 = vmatprep.mubr.msk.f32.mxu0 %vm1812_vm0, %v1813_v6 }
  0xa9   : > { %1535 = vmatmul.mubr.msk.f32.gmra.mrb[76].mxu0 %vm288_vm1, %v266_v7 }
  0xaa   : > { %1537 = vmatprep.mubr.msk.f32.mxu0 %vm1812_vm0, %v1813_v6 }
  0xad   : > { %1538 = vmatmul.mubr.msk.f32.gmra.mrb[78].mxu0 %vm288_vm1, %v267_v8 }
  0xae   : > { %1540 = vmatprep.mubr.msk.f32.mxu0 %vm1812_vm0, %v1813_v6 }
  0xb1   : > { %1541 = vmatmul.mubr.msk.f32.gmra.mrb[80].mxu0 %vm288_vm1, %v268_v9 }
  0xb2   : > { %1543 = vmatprep.mubr.msk.f32.mxu0 %vm1812_vm0, %v1813_v6 }
  0xb5   : > { %1544 = vmatmul.mubr.msk.f32.gmra.mrb[82].mxu0 %vm288_vm1, %v269_v10 }
  0xb6   : > { %1546 = vmatprep.mubr.msk.f32.mxu0 %vm1812_vm0, %v1813_v6 }
  0xb9   : > { %1547 = vmatmul.mubr.msk.f32.gmra.mrb[84].mxu0 %vm288_vm1, %v270_v11 }
  0xba   : > { %1549 = vmatprep.mubr.msk.f32.mxu0 %vm1812_vm0, %v1813_v6 }
  0xbd   : > { %1550 = vmatmul.mubr.msk.f32.gmra.mrb[86].mxu0 %vm288_vm1, %v271_v12 }
  0xbe   : > { %1552 = vmatprep.mubr.msk.f32.mxu0 %vm1812_vm0, %v1813_v6 }
  0xc1   : > { %1553 = vmatmul.mubr.msk.f32.gmra.mrb[88].mxu0 %vm288_vm1, %v272_v13 }
  0xc2   : > { %1555 = vmatprep.mubr.msk.f32.mxu0 %vm1812_vm0, %v1813_v6 }
  0xc5   : > { %1556 = vmatmul.mubr.msk.f32.gmra.mrb[90].mxu0 %vm288_vm1, %v273_v14 }
  0xc6   : > { %1558 = vmatprep.mubr.msk.f32.mxu0 %vm1812_vm0, %v1813_v6 }
  0xc9   : > { %1559 = vmatmul.mubr.msk.f32.gmra.mrb[92].mxu0 %vm288_vm1, %v274_v15 }
  0xca   : > { %1561 = vmatprep.mubr.msk.f32.mxu0 %vm1812_vm0, %v1813_v6 }
  0xcd   : > { %1562 = vmatmul.mubr.msk.f32.gmra.mrb[94].mxu0 %vm288_vm1, %v275_v16 }
  0xce   : > { %1564 = vmatprep.mubr.msk.f32.mxu0 %vm1812_vm0, %v1813_v6 }
  0xd1   : > { %1565 = vmatmul.mubr.msk.f32.gmra.mrb[96].mxu0 %vm288_vm1, %v276_v17 }
  0xd2   : > { %1599 = vmatprep.mubr.msk.f32.mxu0 %vm1812_vm0, %v1813_v6 }
  0xe4   : > { %v502_v19 = vpop.f32.mrb[0].mxu0 }
  0xe5   : > { %v503_v20 = vadd.f32 %v2143_v18, %v502_v19  ;;  %v1422_v21 = vpop.f32.mrb[1].mxu0 }
  0xe7   : > { %v746_v22 = vmax.f32 %v503_v20, 0.0 }
  0xe8   : > { %v507_v23 = vpop.f32.mrb[2].mxu0 }
  0xe9   : > { %v508_v24 = vadd.f32 %v2143_v18, %v507_v23  ;;  %v1425_v25 = vpop.f32.mrb[3].mxu0  ;;  %1600 = vmatmul.mubr.f32.vlgmr.msra.gmra.mrb[98].mxu0 %v746_v22 }
  0xea   : > { %1602 = vmatprep.mubr.msk.f32.mxu0 %vm1812_vm0, %v1813_v6 }
  0xeb   : > { %v747_v26 = vmax.f32 %v508_v24, 0.0 }
  0xec   : > { %v512_v27 = vpop.f32.mrb[4].mxu0 }
  0xed   : > { %v513_v28 = vadd.f32 %v2143_v18, %v512_v27  ;;  %v1428_v29 = vpop.f32.mrb[5].mxu0  ;;  %1603 = vmatmul.mubr.f32.gmra.mrb[100].mxu0 %v747_v26 }
  0xee   : > { %1605 = vmatprep.mubr.msk.f32.mxu0 %vm1812_vm0, %v1813_v6 }
  0xef   : > { %v748_v30 = vmax.f32 %v513_v28, 0.0 }
  0xf0   : > { %v517_v31 = vpop.f32.mrb[6].mxu0 }
  0xf1   : > { %v518_v32 = vadd.f32 %v2143_v18, %v517_v31  ;;  %v1431_v33 = vpop.f32.mrb[7].mxu0  ;;  %1606 = vmatmul.mubr.f32.gmra.mrb[102].mxu0 %v748_v30 }
  0xf3   : > { %v749_v34 = vmax.f32 %v518_v32, 0.0 }
  0xf4   : > { %v522_v35 = vpop.f32.mrb[8].mxu0 }
  0xf5   : > { %v523_v36 = vadd.f32 %v2143_v18, %v522_v35  ;;  %v1434_v37 = vpop.f32.mrb[9].mxu0  ;;  %1609 = vmatmul.mubr.f32.vlgmr.msra.gmra.mrb[0].mxu1 %v749_v34 }
  0xf6   : > { %1611 = vmatprep.mubr.msk.f32.mxu1 %vm1812_vm0, %v1813_v6 }
  0xf7   : > { %v750_v38 = vmax.f32 %v523_v36, 0.0 }
  0xf8   : > { %v527_v39 = vpop.f32.mrb[10].mxu0 }
  0xf9   : > { %v528_v40 = vadd.f32 %v2143_v18, %v527_v39  ;;  %v1437_v41 = vpop.f32.mrb[11].mxu0  ;;  %1612 = vmatmul.mubr.f32.gmra.mrb[2].mxu1 %v750_v38 }
  0xfa   : > { %1614 = vmatprep.mubr.msk.f32.mxu1 %vm1812_vm0, %v1813_v6 }
  0xfb   : > { %v751_v42 = vmax.f32 %v528_v40, 0.0 }
  0xfc   : > { %v532_v43 = vpop.f32.mrb[12].mxu0 }
  0xfd   : > { %v533_v44 = vadd.f32 %v2143_v18, %v532_v43  ;;  %v1440_v45 = vpop.f32.mrb[13].mxu0  ;;  %1615 = vmatmul.mubr.f32.gmra.mrb[4].mxu1 %v751_v42 }
  0xfe   : > { %1617 = vmatprep.mubr.msk.f32.mxu1 %vm1812_vm0, %v1813_v6 }
  0xff   : > { %v752_v46 = vmax.f32 %v533_v44, 0.0 }
 0x100   : > { %v537_v47 = vpop.f32.mrb[14].mxu0 }
 0x101   : > { %v538_v48 = vadd.f32 %v2143_v18, %v537_v47  ;;  %v1443_v49 = vpop.f32.mrb[15].mxu0  ;;  %1618 = vmatmul.mubr.f32.gmra.mrb[6].mxu1 %v752_v46 }
 0x102   : > { %1620 = vmatprep.mubr.msk.f32.mxu1 %vm1812_vm0, %v1813_v6 }
 0x103   : > { %v753_v50 = vmax.f32 %v538_v48, 0.0 }
 0x104   : > { %v542_v51 = vpop.f32.mrb[16].mxu0 }
 0x105   : > { %v543_v52 = vadd.f32 %v2143_v18, %v542_v51  ;;  %v1446_v53 = vpop.f32.mrb[17].mxu0  ;;  %1621 = vmatmul.mubr.f32.gmra.mrb[8].mxu1 %v753_v50 }
 0x106   : > { %1623 = vmatprep.mubr.msk.f32.mxu1 %vm1812_vm0, %v1813_v6 }
 0x107   : > { %v754_v54 = vmax.f32 %v543_v52, 0.0 }
 0x108   : > { %v547_v55 = vpop.f32.mrb[18].mxu0 }
 0x109   : > { %v548_v56 = vadd.f32 %v2143_v18, %v547_v55  ;;  %v1449_v57 = vpop.f32.mrb[19].mxu0  ;;  %1624 = vmatmul.mubr.f32.gmra.mrb[10].mxu1 %v754_v54 }
 0x10a   : > { %1626 = vmatprep.mubr.msk.f32.mxu1 %vm1812_vm0, %v1813_v6 }
 0x10b   : > { %v755_v58 = vmax.f32 %v548_v56, 0.0 }
 0x10c   : > { %v552_v59 = vpop.f32.mrb[20].mxu0 }
 0x10d   : > { %v553_v60 = vadd.f32 %v2143_v18, %v552_v59  ;;  %v1452_v61 = vpop.f32.mrb[21].mxu0  ;;  %1627 = vmatmul.mubr.f32.gmra.mrb[12].mxu1 %v755_v58 }
 0x10e   : > { %1629 = vmatprep.mubr.msk.f32.mxu1 %vm1812_vm0, %v1813_v6 }
 0x10f   : > { %v756_v62 = vmax.f32 %v553_v60, 0.0 }
 0x110   : > { %v557_v63 = vpop.f32.mrb[22].mxu0 }
 0x111   : > { %v558_v0 = vadd.f32 %v2143_v18, %v557_v63  ;;  %v1455_v1 = vpop.f32.mrb[23].mxu0  ;;  %1630 = vmatmul.mubr.f32.gmra.mrb[14].mxu1 %v756_v62 }
 0x112   : > { %1632 = vmatprep.mubr.msk.f32.mxu1 %vm1812_vm0, %v1813_v6 }
 0x113   : > { %v757_v2 = vmax.f32 %v558_v0, 0.0 }
 0x114   : > { %v562_v3 = vpop.f32.mrb[24].mxu0 }
 0x115   : > { %v563_v4 = vadd.f32 %v2143_v18, %v562_v3  ;;  %v1458_v5 = vpop.f32.mrb[25].mxu0  ;;  %1633 = vmatmul.mubr.f32.gmra.mrb[16].mxu1 %v757_v2 }
 0x116   : > { %1635 = vmatprep.mubr.msk.f32.mxu1 %vm1812_vm0, %v1813_v6 }
 0x117   : > { %v758_v7 = vmax.f32 %v563_v4, 0.0 }
 0x118   : > { %v567_v8 = vpop.f32.mrb[26].mxu0 }
 0x119   : > { %v568_v9 = vadd.f32 %v2143_v18, %v567_v8  ;;  %v1461_v10 = vpop.f32.mrb[27].mxu0  ;;  %1636 = vmatmul.mubr.f32.gmra.mrb[18].mxu1 %v758_v7 }
 0x11a   : > { %1638 = vmatprep.mubr.msk.f32.mxu1 %vm1812_vm0, %v1813_v6 }
 0x11b   : > { %v759_v11 = vmax.f32 %v568_v9, 0.0 }
 0x11c   : > { %v572_v12 = vpop.f32.mrb[28].mxu0 }
 0x11d   : > { %v573_v13 = vadd.f32 %v2143_v18, %v572_v12  ;;  %v1464_v14 = vpop.f32.mrb[29].mxu0  ;;  %1639 = vmatmul.mubr.f32.gmra.mrb[20].mxu1 %v759_v11 }
 0x11e   : > { %1641 = vmatprep.mubr.msk.f32.mxu1 %vm1812_vm0, %v1813_v6 }
 0x11f   : > { %v760_v15 = vmax.f32 %v573_v13, 0.0 }
 0x120   : > { %v577_v16 = vpop.f32.mrb[30].mxu0 }
 0x121   : > { %v578_v17 = vadd.f32 %v2143_v18, %v577_v16  ;;  %v1467_v19 = vpop.f32.mrb[31].mxu0  ;;  %1642 = vmatmul.mubr.f32.gmra.mrb[22].mxu1 %v760_v15 }
 0x122   : > { %1644 = vmatprep.mubr.msk.f32.mxu1 %vm1812_vm0, %v1813_v6 }
 0x123   : > { %v761_v20 = vmax.f32 %v578_v17, 0.0 }
 0x124   : > { %v582_v21 = vpop.f32.mrb[32].mxu0 }
 0x125   : > { %v583_v22 = vadd.f32 %v2143_v18, %v582_v21  ;;  %v1470_v23 = vpop.f32.mrb[33].mxu0  ;;  %1645 = vmatmul.mubr.f32.gmra.mrb[24].mxu1 %v761_v20 }
 0x126   : > { %1647 = vmatprep.mubr.msk.f32.mxu1 %vm1812_vm0, %v1813_v6 }
 0x127   : > { %v762_v24 = vmax.f32 %v583_v22, 0.0 }
 0x128   : > { %v587_v25 = vpop.f32.mrb[34].mxu0 }
 0x129   : > { %v588_v26 = vadd.f32 %v2143_v18, %v587_v25  ;;  %v1473_v27 = vpop.f32.mrb[35].mxu0  ;;  %1648 = vmatmul.mubr.f32.gmra.mrb[26].mxu1 %v762_v24 }
 0x12a   : > { %1650 = vmatprep.mubr.msk.f32.mxu1 %vm1812_vm0, %v1813_v6 }
 0x12b   : > { %v763_v28 = vmax.f32 %v588_v26, 0.0 }
 0x12c   : > { %v592_v29 = vpop.f32.mrb[36].mxu0 }
 0x12d   : > { %v593_v30 = vadd.f32 %v2143_v18, %v592_v29  ;;  %v1476_v31 = vpop.f32.mrb[37].mxu0  ;;  %1651 = vmatmul.mubr.f32.gmra.mrb[28].mxu1 %v763_v28 }
 0x12e   : > { %1653 = vmatprep.mubr.msk.f32.mxu1 %vm1812_vm0, %v1813_v6 }
 0x12f   : > { %v764_v32 = vmax.f32 %v593_v30, 0.0 }
 0x130   : > { %v597_v33 = vpop.f32.mrb[38].mxu0 }
 0x131   : > { %v598_v34 = vadd.f32 %v2143_v18, %v597_v33  ;;  %v1479_v35 = vpop.f32.mrb[39].mxu0  ;;  %1654 = vmatmul.mubr.f32.gmra.mrb[30].mxu1 %v764_v32 }
 0x132   : > { %1656 = vmatprep.mubr.msk.f32.mxu1 %vm1812_vm0, %v1813_v6 }
 0x133   : > { %v765_v36 = vmax.f32 %v598_v34, 0.0 }
 0x134   : > { %v602_v37 = vpop.f32.mrb[40].mxu0 }
 0x135   : > { %v603_v38 = vadd.f32 %v2143_v18, %v602_v37  ;;  %v1482_v39 = vpop.f32.mrb[41].mxu0  ;;  %1657 = vmatmul.mubr.f32.gmra.mrb[32].mxu1 %v765_v36 }
 0x136   : > { %1659 = vmatprep.mubr.msk.f32.mxu1 %vm1812_vm0, %v1813_v6 }
 0x137   : > { %v766_v40 = vmax.f32 %v603_v38, 0.0 }
 0x138   : > { %v607_v41 = vpop.f32.mrb[42].mxu0 }
 0x139   : > { %v608_v42 = vadd.f32 %v2143_v18, %v607_v41  ;;  %v1485_v43 = vpop.f32.mrb[43].mxu0  ;;  %1660 = vmatmul.mubr.f32.gmra.mrb[34].mxu1 %v766_v40 }
 0x13a   : > { %1662 = vmatprep.mubr.msk.f32.mxu1 %vm1812_vm0, %v1813_v6 }
 0x13b   : > { %v767_v44 = vmax.f32 %v608_v42, 0.0 }
 0x13c   : > { %v612_v45 = vpop.f32.mrb[44].mxu0 }
 0x13d   : > { %v613_v46 = vadd.f32 %v2143_v18, %v612_v45  ;;  %v1488_v47 = vpop.f32.mrb[45].mxu0  ;;  %1663 = vmatmul.mubr.f32.gmra.mrb[36].mxu1 %v767_v44 }
 0x13e   : > { %1665 = vmatprep.mubr.msk.f32.mxu1 %vm1812_vm0, %v1813_v6 }
 0x13f   : > { %v768_v48 = vmax.f32 %v613_v46, 0.0 }
 0x140   : > { %v617_v49 = vpop.f32.mrb[46].mxu0 }
 0x141   : > { %v618_v50 = vadd.f32 %v2143_v18, %v617_v49  ;;  %v1491_v51 = vpop.f32.mrb[47].mxu0  ;;  %1666 = vmatmul.mubr.f32.gmra.mrb[38].mxu1 %v768_v48 }
 0x142   : > { %1668 = vmatprep.mubr.msk.f32.mxu1 %vm1812_vm0, %v1813_v6 }
 0x143   : > { %v769_v52 = vmax.f32 %v618_v50, 0.0 }
 0x144   : > { %v622_v53 = vpop.f32.mrb[48].mxu0 }
 0x145   : > { %v623_v54 = vadd.f32 %v2143_v18, %v622_v53  ;;  %v1494_v55 = vpop.f32.mrb[49].mxu0  ;;  %1669 = vmatmul.mubr.f32.gmra.mrb[40].mxu1 %v769_v52 }
 0x146   : > { %1671 = vmatprep.mubr.msk.f32.mxu1 %vm1812_vm0, %v1813_v6 }
 0x147   : > { %v770_v56 = vmax.f32 %v623_v54, 0.0 }
 0x148   : > { %v627_v57 = vpop.f32.mrb[50].mxu0 }
 0x149   : > { %v628_v58 = vadd.f32 %v2143_v18, %v627_v57  ;;  %v1497_v59 = vpop.f32.mrb[51].mxu0  ;;  %1672 = vmatmul.mubr.f32.gmra.mrb[42].mxu1 %v770_v56 }
 0x14a   : > { %1674 = vmatprep.mubr.msk.f32.mxu1 %vm1812_vm0, %v1813_v6 }
 0x14b   : > { %v771_v60 = vmax.f32 %v628_v58, 0.0 }
 0x14c   : > { %v632_v61 = vpop.f32.mrb[52].mxu0 }
 0x14d   : > { %v633_v62 = vadd.f32 %v2143_v18, %v632_v61  ;;  %v1500_v63 = vpop.f32.mrb[53].mxu0  ;;  %1675 = vmatmul.mubr.f32.gmra.mrb[44].mxu1 %v771_v60 }
 0x14e   : > { %1677 = vmatprep.mubr.msk.f32.mxu1 %vm1812_vm0, %v1813_v6 }
 0x14f   : > { %v772_v0 = vmax.f32 %v633_v62, 0.0 }
 0x150   : > { %v637_v1 = vpop.f32.mrb[54].mxu0 }
 0x151   : > { %v638_v2 = vadd.f32 %v2143_v18, %v637_v1  ;;  %v1503_v3 = vpop.f32.mrb[55].mxu0  ;;  %1678 = vmatmul.mubr.f32.gmra.mrb[46].mxu1 %v772_v0 }
 0x152   : > { %1680 = vmatprep.mubr.msk.f32.mxu1 %vm1812_vm0, %v1813_v6 }
 0x153   : > { %v773_v4 = vmax.f32 %v638_v2, 0.0 }
 0x154   : > { %v642_v5 = vpop.f32.mrb[56].mxu0 }
 0x155   : > { %v643_v7 = vadd.f32 %v2143_v18, %v642_v5  ;;  %v1506_v8 = vpop.f32.mrb[57].mxu0  ;;  %1681 = vmatmul.mubr.f32.gmra.mrb[48].mxu1 %v773_v4 }
 0x156   : > { %1683 = vmatprep.mubr.msk.f32.mxu1 %vm1812_vm0, %v1813_v6 }
 0x157   : > { %v774_v9 = vmax.f32 %v643_v7, 0.0 }
 0x158   : > { %v647_v10 = vpop.f32.mrb[58].mxu0 }
 0x159   : > { %v648_v11 = vadd.f32 %v2143_v18, %v647_v10  ;;  %v1509_v12 = vpop.f32.mrb[59].mxu0  ;;  %1684 = vmatmul.mubr.f32.gmra.mrb[50].mxu1 %v774_v9 }
 0x15a   : > { %1686 = vmatprep.mubr.msk.f32.mxu1 %vm1812_vm0, %v1813_v6 }
 0x15b   : > { %v775_v13 = vmax.f32 %v648_v11, 0.0 }
 0x15c   : > { %v652_v14 = vpop.f32.mrb[60].mxu0 }
 0x15d   : > { %v653_v15 = vadd.f32 %v2143_v18, %v652_v14  ;;  %v1512_v16 = vpop.f32.mrb[61].mxu0  ;;  %1687 = vmatmul.mubr.f32.gmra.mrb[52].mxu1 %v775_v13 }
 0x15e   : > { %1689 = vmatprep.mubr.msk.f32.mxu1 %vm1812_vm0, %v1813_v6 }
 0x15f   : > { %v776_v17 = vmax.f32 %v653_v15, 0.0 }
 0x160   : > { %v657_v19 = vpop.f32.mrb[62].mxu0 }
 0x161   : > { %v658_v20 = vadd.f32 %v2143_v18, %v657_v19  ;;  %v1515_v21 = vpop.f32.mrb[63].mxu0  ;;  %1690 = vmatmul.mubr.f32.gmra.mrb[54].mxu1 %v776_v17 }
 0x162   : > { %1692 = vmatprep.mubr.msk.f32.mxu1 %vm1812_vm0, %v1813_v6 }
 0x163   : > { %v777_v22 = vmax.f32 %v658_v20, 0.0 }
 0x164   : > { %v662_v23 = vpop.f32.mrb[64].mxu0 }
 0x165   : > { %v663_v24 = vadd.f32 %v2143_v18, %v662_v23  ;;  %v1518_v25 = vpop.f32.mrb[65].mxu0  ;;  %1693 = vmatmul.mubr.f32.gmra.mrb[56].mxu1 %v777_v22 }
 0x166   : > { %1695 = vmatprep.mubr.msk.f32.mxu1 %vm1812_vm0, %v1813_v6 }
 0x167   : > { %v778_v26 = vmax.f32 %v663_v24, 0.0 }
 0x168   : > { %v667_v27 = vpop.f32.mrb[66].mxu0 }
 0x169   : > { %v668_v28 = vadd.f32 %v2143_v18, %v667_v27  ;;  %v1521_v29 = vpop.f32.mrb[67].mxu0  ;;  %1696 = vmatmul.mubr.f32.gmra.mrb[58].mxu1 %v778_v26 }
 0x16a   : > { %1698 = vmatprep.mubr.msk.f32.mxu1 %vm1812_vm0, %v1813_v6  ;;  %v2291_v29 = vld [vmem:[%s2454_s4] ss:$0 sm:$0xff] }
 0x16b   : > { %v779_v30 = vmax.f32 %v668_v28, 0.0 }
 0x16c   : > { %v672_v31 = vpop.f32.mrb[68].mxu0 }
 0x16d   : > { %v673_v32 = vadd.f32 %v2143_v18, %v672_v31  ;;  %v1524_v33 = vpop.f32.mrb[69].mxu0  ;;  %1699 = vmatmul.mubr.f32.gmra.mrb[60].mxu1 %v779_v30 }
 0x16e   : > { %1701 = vmatprep.mubr.msk.f32.mxu1 %vm1812_vm0, %v1813_v6 }
 0x16f   : > { %v780_v34 = vmax.f32 %v673_v32, 0.0 }
 0x170   : > { %v677_v35 = vpop.f32.mrb[70].mxu0 }
 0x171   : > { %v678_v36 = vadd.f32 %v2143_v18, %v677_v35  ;;  %v1527_v37 = vpop.f32.mrb[71].mxu0  ;;  %1702 = vmatmul.mubr.f32.gmra.mrb[62].mxu1 %v780_v34 }
 0x172   : > { %1704 = vmatprep.mubr.msk.f32.mxu1 %vm1812_vm0, %v1813_v6 }
 0x173   : > { %v781_v38 = vmax.f32 %v678_v36, 0.0 }
 0x174   : > { %v682_v39 = vpop.f32.mrb[72].mxu0 }
 0x175   : > { %v683_v40 = vadd.f32 %v2143_v18, %v682_v39  ;;  %v1530_v41 = vpop.f32.mrb[73].mxu0  ;;  %1705 = vmatmul.mubr.f32.gmra.mrb[64].mxu1 %v781_v38 }
 0x176   : > { %1707 = vmatprep.mubr.msk.f32.mxu1 %vm1812_vm0, %v1813_v6 }
 0x177   : > { %v782_v42 = vmax.f32 %v683_v40, 0.0 }
 0x178   : > { %v687_v43 = vpop.f32.mrb[74].mxu0 }
 0x179   : > { %v688_v44 = vadd.f32 %v2143_v18, %v687_v43  ;;  %v1533_v45 = vpop.f32.mrb[75].mxu0  ;;  %1708 = vmatmul.mubr.f32.gmra.mrb[66].mxu1 %v782_v42 }
 0x17a   : > { %1710 = vmatprep.mubr.msk.f32.mxu1 %vm1812_vm0, %v1813_v6 }
 0x17b   : > { %v783_v46 = vmax.f32 %v688_v44, 0.0 }
 0x17c   : > { %v692_v47 = vpop.f32.mrb[76].mxu0 }
 0x17d   : > { %v693_v48 = vadd.f32 %v2143_v18, %v692_v47  ;;  %v1536_v49 = vpop.f32.mrb[77].mxu0  ;;  %1711 = vmatmul.mubr.f32.gmra.mrb[68].mxu1 %v783_v46 }
 0x17e   : > { %1713 = vmatprep.mubr.msk.f32.mxu1 %vm1812_vm0, %v1813_v6 }
 0x17f   : > { %v784_v50 = vmax.f32 %v693_v48, 0.0 }
 0x180   : > { %v697_v51 = vpop.f32.mrb[78].mxu0 }
 0x181   : > { %v698_v52 = vadd.f32 %v2143_v18, %v697_v51  ;;  %v1539_v53 = vpop.f32.mrb[79].mxu0  ;;  %1714 = vmatmul.mubr.f32.gmra.mrb[70].mxu1 %v784_v50 }
 0x182   : > { %1716 = vmatprep.mubr.msk.f32.mxu1 %vm1812_vm0, %v1813_v6 }
 0x183   : > { %v785_v54 = vmax.f32 %v698_v52, 0.0 }
 0x184   : > { %v702_v55 = vpop.f32.mrb[80].mxu0 }
 0x185   : > { %v703_v56 = vadd.f32 %v2143_v18, %v702_v55  ;;  %v1542_v57 = vpop.f32.mrb[81].mxu0  ;;  %1717 = vmatmul.mubr.f32.gmra.mrb[72].mxu1 %v785_v54 }
 0x186   : > { %1719 = vmatprep.mubr.msk.f32.mxu1 %vm1812_vm0, %v1813_v6 }
 0x187   : > { %v786_v58 = vmax.f32 %v703_v56, 0.0 }
 0x188   : > { %v707_v59 = vpop.f32.mrb[82].mxu0 }
 0x189   : > { %v708_v60 = vadd.f32 %v2143_v18, %v707_v59  ;;  %v1545_v61 = vpop.f32.mrb[83].mxu0  ;;  %1720 = vmatmul.mubr.f32.gmra.mrb[74].mxu1 %v786_v58 }
 0x18a   : > { %1722 = vmatprep.mubr.msk.f32.mxu1 %vm1812_vm0, %v1813_v6 }
 0x18b   : > { %v787_v62 = vmax.f32 %v708_v60, 0.0 }
 0x18c   : > { %v712_v63 = vpop.f32.mrb[84].mxu0 }
 0x18d   : > { %v713_v0 = vadd.f32 %v2143_v18, %v712_v63  ;;  %v1548_v1 = vpop.f32.mrb[85].mxu0  ;;  %1723 = vmatmul.mubr.f32.gmra.mrb[76].mxu1 %v787_v62 }
 0x18e   : > { %1725 = vmatprep.mubr.msk.f32.mxu1 %vm1812_vm0, %v1813_v6 }
 0x18f   : > { %v788_v2 = vmax.f32 %v713_v0, 0.0 }
 0x190   : > { %v717_v3 = vpop.f32.mrb[86].mxu0 }
 0x191   : > { %v718_v4 = vadd.f32 %v2143_v18, %v717_v3  ;;  %v1551_v5 = vpop.f32.mrb[87].mxu0  ;;  %1726 = vmatmul.mubr.f32.gmra.mrb[78].mxu1 %v788_v2 }
 0x192   : > { %1728 = vmatprep.mubr.msk.f32.mxu1 %vm1812_vm0, %v1813_v6 }
 0x193   : > { %v789_v7 = vmax.f32 %v718_v4, 0.0 }
 0x194   : > { %v722_v8 = vpop.f32.mrb[88].mxu0 }
 0x195   : > { %v723_v9 = vadd.f32 %v2143_v18, %v722_v8  ;;  %v1554_v10 = vpop.f32.mrb[89].mxu0  ;;  %1729 = vmatmul.mubr.f32.gmra.mrb[80].mxu1 %v789_v7 }
 0x196   : > { %1731 = vmatprep.mubr.msk.f32.mxu1 %vm1812_vm0, %v1813_v6 }
 0x197   : > { %v790_v11 = vmax.f32 %v723_v9, 0.0 }
 0x198   : > { %v727_v12 = vpop.f32.mrb[90].mxu0 }
 0x199   : > { %v728_v13 = vadd.f32 %v2143_v18, %v727_v12  ;;  %v1557_v14 = vpop.f32.mrb[91].mxu0  ;;  %1732 = vmatmul.mubr.f32.gmra.mrb[82].mxu1 %v790_v11 }
 0x19a   : > { %1734 = vmatprep.mubr.msk.f32.mxu1 %vm1812_vm0, %v1813_v6 }
 0x19b   : > { %v791_v15 = vmax.f32 %v728_v13, 0.0 }
 0x19c   : > { %v732_v16 = vpop.f32.mrb[92].mxu0 }
 0x19d   : > { %v733_v17 = vadd.f32 %v2143_v18, %v732_v16  ;;  %v1560_v19 = vpop.f32.mrb[93].mxu0  ;;  %1735 = vmatmul.mubr.f32.gmra.mrb[84].mxu1 %v791_v15 }
 0x19e   : > { %1737 = vmatprep.mubr.msk.f32.mxu1 %vm1812_vm0, %v1813_v6 }
 0x19f   : > { %v792_v20 = vmax.f32 %v733_v17, 0.0 }
 0x1a0   : > { %v737_v21 = vpop.f32.mrb[94].mxu0 }
 0x1a1   : > { %v738_v22 = vadd.f32 %v2143_v18, %v737_v21  ;;  %v1563_v23 = vpop.f32.mrb[95].mxu0  ;;  %1738 = vmatmul.mubr.f32.gmra.mrb[86].mxu1 %v792_v20 }
 0x1a2   : > { %1740 = vmatprep.mubr.msk.f32.mxu1 %vm1812_vm0, %v1813_v6 }
 0x1a3   : > { %v793_v24 = vmax.f32 %v738_v22, 0.0 }
 0x1a4   : > { %v742_v25 = vpop.f32.mrb[96].mxu0 }
 0x1a5   : > { %v743_v26 = vadd.f32 %v2143_v18, %v742_v25  ;;  %v1566_v27 = vpop.f32.mrb[97].mxu0  ;;  %1741 = vmatmul.mubr.f32.gmra.mrb[88].mxu1 %v793_v24 }
 0x1a6   : > { %1743 = vmatprep.mubr.msk.f32.mxu1 %vm1812_vm0, %v1813_v6 }
 0x1a7   : > { %v794_v28 = vmax.f32 %v743_v26, 0.0 }
 0x1a9   : > { %1744 = vmatmul.mubr.f32.gmra.mrb[90].mxu1 %v794_v28 }
 0x1bc   : > { %v884_v18 = vpop.f32.mrb[98].mxu0 }
 0x1bd   : > { %v885_v6 = vadd.f32 %v2291_v29, %v884_v18  ;;  %v1601_v30 = vpop.f32.mrb[99].mxu0 }
 0x1bf   : > { %1129 = vst.msk [vmem:[%s2298_s25] sm:$0xff] %vm1128_vm2, %v885_v6 }
 0x1c0   : > { %v889_v31 = vpop.f32.mrb[100].mxu0 }
 0x1c1   : > { %v890_v32 = vadd.f32 %v2291_v29, %v889_v31  ;;  %v1604_v33 = vpop.f32.mrb[101].mxu0 }
 0x1c3   : > { %1130 = vst.msk [vmem:[%s2298_s25 + $0x8] sm:$0xff] %vm1128_vm2, %v890_v32 }
 0x1c4   : > { %v894_v34 = vpop.f32.mrb[102].mxu0 }
 0x1c5   : > { %v895_v35 = vadd.f32 %v2291_v29, %v894_v34  ;;  %v1607_v36 = vpop.f32.mrb[103].mxu0 }
 0x1c7   : > { %1131 = vst.msk [vmem:[%s2298_s25 + $0x10] sm:$0xff] %vm1128_vm2, %v895_v35 }
 0x1c8   : > { %v899_v37 = vpop.f32.mrb[0].mxu1 }
 0x1c9   : > { %v900_v38 = vadd.f32 %v2291_v29, %v899_v37  ;;  %v1610_v39 = vpop.f32.mrb[1].mxu1 }
 0x1cb   : > { %1132 = vst.msk [vmem:[%s2298_s25 + $0x18] sm:$0xff] %vm1128_vm2, %v900_v38 }
 0x1cc   : > { %v904_v40 = vpop.f32.mrb[2].mxu1 }
 0x1cd   : > { %v905_v41 = vadd.f32 %v2291_v29, %v904_v40  ;;  %v1613_v42 = vpop.f32.mrb[3].mxu1 }
 0x1cf   : > { %1133 = vst.msk [vmem:[%s2298_s25 + $0x20] sm:$0xff] %vm1128_vm2, %v905_v41 }
 0x1d0   : > { %v909_v43 = vpop.f32.mrb[4].mxu1 }
 0x1d1   : > { %v910_v44 = vadd.f32 %v2291_v29, %v909_v43  ;;  %v1616_v45 = vpop.f32.mrb[5].mxu1 }
 0x1d3   : > { %1134 = vst.msk [vmem:[%s2298_s25 + $0x28] sm:$0xff] %vm1128_vm2, %v910_v44 }
 0x1d4   : > { %v914_v46 = vpop.f32.mrb[6].mxu1 }
 0x1d5   : > { %v915_v47 = vadd.f32 %v2291_v29, %v914_v46  ;;  %v1619_v48 = vpop.f32.mrb[7].mxu1 }
 0x1d7   : > { %1135 = vst.msk [vmem:[%s2298_s25 + $0x30] sm:$0xff] %vm1128_vm2, %v915_v47 }
 0x1d8   : > { %v919_v49 = vpop.f32.mrb[8].mxu1 }
 0x1d9   : > { %v920_v50 = vadd.f32 %v2291_v29, %v919_v49  ;;  %v1622_v51 = vpop.f32.mrb[9].mxu1 }
 0x1db   : > { %1136 = vst.msk [vmem:[%s2298_s25 + $0x38] sm:$0xff] %vm1128_vm2, %v920_v50 }
 0x1dc   : > { %v924_v52 = vpop.f32.mrb[10].mxu1 }
 0x1dd   : > { %v925_v53 = vadd.f32 %v2291_v29, %v924_v52  ;;  %v1625_v54 = vpop.f32.mrb[11].mxu1 }
 0x1df   : > { %1137 = vst.msk [vmem:[%s2298_s25 + $0x40] sm:$0xff] %vm1128_vm2, %v925_v53 }
 0x1e0   : > { %v929_v55 = vpop.f32.mrb[12].mxu1 }
 0x1e1   : > { %v930_v56 = vadd.f32 %v2291_v29, %v929_v55  ;;  %v1628_v57 = vpop.f32.mrb[13].mxu1 }
 0x1e3   : > { %1138 = vst.msk [vmem:[%s2298_s25 + $0x48] sm:$0xff] %vm1128_vm2, %v930_v56 }
 0x1e4   : > { %v934_v58 = vpop.f32.mrb[14].mxu1 }
 0x1e5   : > { %v935_v59 = vadd.f32 %v2291_v29, %v934_v58  ;;  %v1631_v60 = vpop.f32.mrb[15].mxu1 }
 0x1e7   : > { %1139 = vst.msk [vmem:[%s2298_s25 + $0x50] sm:$0xff] %vm1128_vm2, %v935_v59 }
 0x1e8   : > { %v939_v61 = vpop.f32.mrb[16].mxu1 }
 0x1e9   : > { %v940_v62 = vadd.f32 %v2291_v29, %v939_v61  ;;  %v1634_v63 = vpop.f32.mrb[17].mxu1 }
 0x1eb   : > { %1140 = vst.msk [vmem:[%s2298_s25 + $0x58] sm:$0xff] %vm1128_vm2, %v940_v62 }
 0x1ec   : > { %v944_v0 = vpop.f32.mrb[18].mxu1 }
 0x1ed   : > { %v945_v1 = vadd.f32 %v2291_v29, %v944_v0  ;;  %v1637_v2 = vpop.f32.mrb[19].mxu1 }
 0x1ef   : > { %1141 = vst.msk [vmem:[%s2298_s25 + $0x60] sm:$0xff] %vm1128_vm2, %v945_v1 }
 0x1f0   : > { %v949_v3 = vpop.f32.mrb[20].mxu1 }
 0x1f1   : > { %v950_v4 = vadd.f32 %v2291_v29, %v949_v3  ;;  %v1640_v5 = vpop.f32.mrb[21].mxu1 }
 0x1f3   : > { %1142 = vst.msk [vmem:[%s2298_s25 + $0x68] sm:$0xff] %vm1128_vm2, %v950_v4 }
 0x1f4   : > { %v954_v7 = vpop.f32.mrb[22].mxu1 }
 0x1f5   : > { %v955_v8 = vadd.f32 %v2291_v29, %v954_v7  ;;  %v1643_v9 = vpop.f32.mrb[23].mxu1 }
 0x1f7   : > { %1143 = vst.msk [vmem:[%s2298_s25 + $0x70] sm:$0xff] %vm1128_vm2, %v955_v8 }
 0x1f8   : > { %v959_v10 = vpop.f32.mrb[24].mxu1 }
 0x1f9   : > { %v960_v11 = vadd.f32 %v2291_v29, %v959_v10  ;;  %v1646_v12 = vpop.f32.mrb[25].mxu1 }
 0x1fb   : > { %1144 = vst.msk [vmem:[%s2298_s25 + $0x78] sm:$0xff] %vm1128_vm2, %v960_v11 }
 0x1fc   : > { %v964_v13 = vpop.f32.mrb[26].mxu1 }
 0x1fd   : > { %v965_v14 = vadd.f32 %v2291_v29, %v964_v13  ;;  %v1649_v15 = vpop.f32.mrb[27].mxu1 }
 0x1ff   : > { %1145 = vst.msk [vmem:[%s2298_s25 + $0x80] sm:$0xff] %vm1128_vm2, %v965_v14 }
 0x200   : > { %v969_v16 = vpop.f32.mrb[28].mxu1 }
 0x201   : > { %v970_v17 = vadd.f32 %v2291_v29, %v969_v16  ;;  %v1652_v19 = vpop.f32.mrb[29].mxu1 }
 0x203   : > { %1146 = vst.msk [vmem:[%s2298_s25 + $0x88] sm:$0xff] %vm1128_vm2, %v970_v17 }
 0x204   : > { %v974_v20 = vpop.f32.mrb[30].mxu1 }
 0x205   : > { %v975_v21 = vadd.f32 %v2291_v29, %v974_v20  ;;  %v1655_v22 = vpop.f32.mrb[31].mxu1 }
 0x207   : > { %1147 = vst.msk [vmem:[%s2298_s25 + $0x90] sm:$0xff] %vm1128_vm2, %v975_v21 }
 0x208   : > { %v979_v23 = vpop.f32.mrb[32].mxu1 }
 0x209   : > { %v980_v24 = vadd.f32 %v2291_v29, %v979_v23  ;;  %v1658_v25 = vpop.f32.mrb[33].mxu1 }
 0x20b   : > { %1148 = vst.msk [vmem:[%s2298_s25 + $0x98] sm:$0xff] %vm1128_vm2, %v980_v24 }
 0x20c   : > { %v984_v26 = vpop.f32.mrb[34].mxu1 }
 0x20d   : > { %v985_v27 = vadd.f32 %v2291_v29, %v984_v26  ;;  %v1661_v28 = vpop.f32.mrb[35].mxu1 }
 0x20f   : > { %1149 = vst.msk [vmem:[%s2298_s25 + $0xa0] sm:$0xff] %vm1128_vm2, %v985_v27 }
 0x210   : > { %v989_v18 = vpop.f32.mrb[36].mxu1 }
 0x211   : > { %v990_v6 = vadd.f32 %v2291_v29, %v989_v18  ;;  %v1664_v30 = vpop.f32.mrb[37].mxu1 }
 0x213   : > { %1150 = vst.msk [vmem:[%s2298_s25 + $0xa8] sm:$0xff] %vm1128_vm2, %v990_v6 }
 0x214   : > { %v994_v31 = vpop.f32.mrb[38].mxu1 }
 0x215   : > { %v995_v32 = vadd.f32 %v2291_v29, %v994_v31  ;;  %v1667_v33 = vpop.f32.mrb[39].mxu1 }
 0x217   : > { %1151 = vst.msk [vmem:[%s2298_s25 + $0xb0] sm:$0xff] %vm1128_vm2, %v995_v32 }
 0x218   : > { %v999_v34 = vpop.f32.mrb[40].mxu1 }
 0x219   : > { %v1000_v35 = vadd.f32 %v2291_v29, %v999_v34  ;;  %v1670_v36 = vpop.f32.mrb[41].mxu1 }
 0x21b   : > { %1152 = vst.msk [vmem:[%s2298_s25 + $0xb8] sm:$0xff] %vm1128_vm2, %v1000_v35 }
 0x21c   : > { %v1004_v37 = vpop.f32.mrb[42].mxu1 }
 0x21d   : > { %v1005_v38 = vadd.f32 %v2291_v29, %v1004_v37  ;;  %v1673_v39 = vpop.f32.mrb[43].mxu1 }
 0x21f   : > { %1153 = vst.msk [vmem:[%s2298_s25 + $0xc0] sm:$0xff] %vm1128_vm2, %v1005_v38 }
 0x220   : > { %v1009_v40 = vpop.f32.mrb[44].mxu1 }
 0x221   : > { %v1010_v41 = vadd.f32 %v2291_v29, %v1009_v40  ;;  %v1676_v42 = vpop.f32.mrb[45].mxu1 }
 0x223   : > { %1154 = vst.msk [vmem:[%s2298_s25 + $0xc8] sm:$0xff] %vm1128_vm2, %v1010_v41 }
 0x224   : > { %v1014_v43 = vpop.f32.mrb[46].mxu1 }
 0x225   : > { %v1015_v44 = vadd.f32 %v2291_v29, %v1014_v43  ;;  %v1679_v45 = vpop.f32.mrb[47].mxu1 }
 0x227   : > { %1155 = vst.msk [vmem:[%s2298_s25 + $0xd0] sm:$0xff] %vm1128_vm2, %v1015_v44 }
 0x228   : > { %v1019_v46 = vpop.f32.mrb[48].mxu1 }
 0x229   : > { %v1020_v47 = vadd.f32 %v2291_v29, %v1019_v46  ;;  %v1682_v48 = vpop.f32.mrb[49].mxu1 }
 0x22b   : > { %1156 = vst.msk [vmem:[%s2298_s25 + $0xd8] sm:$0xff] %vm1128_vm2, %v1020_v47 }
 0x22c   : > { %v1024_v49 = vpop.f32.mrb[50].mxu1 }
 0x22d   : > { %v1025_v50 = vadd.f32 %v2291_v29, %v1024_v49  ;;  %v1685_v51 = vpop.f32.mrb[51].mxu1 }
 0x22f   : > { %1157 = vst.msk [vmem:[%s2298_s25 + $0xe0] sm:$0xff] %vm1128_vm2, %v1025_v50 }
 0x230   : > { %v1029_v52 = vpop.f32.mrb[52].mxu1 }
 0x231   : > { %v1030_v53 = vadd.f32 %v2291_v29, %v1029_v52  ;;  %v1688_v54 = vpop.f32.mrb[53].mxu1 }
 0x233   : > { %1158 = vst.msk [vmem:[%s2298_s25 + $0xe8] sm:$0xff] %vm1128_vm2, %v1030_v53 }
 0x234   : > { %v1034_v55 = vpop.f32.mrb[54].mxu1 }
 0x235   : > { %v1035_v56 = vadd.f32 %v2291_v29, %v1034_v55  ;;  %v1691_v57 = vpop.f32.mrb[55].mxu1 }
 0x237   : > { %1159 = vst.msk [vmem:[%s2298_s25 + $0xf0] sm:$0xff] %vm1128_vm2, %v1035_v56 }
 0x238   : > { %v1039_v58 = vpop.f32.mrb[56].mxu1 }
 0x239   : > { %v1040_v59 = vadd.f32 %v2291_v29, %v1039_v58  ;;  %v1694_v60 = vpop.f32.mrb[57].mxu1 }
 0x23b   : > { %1160 = vst.msk [vmem:[%s2298_s25 + $0xf8] sm:$0xff] %vm1128_vm2, %v1040_v59 }
 0x23c   : > { %v1044_v61 = vpop.f32.mrb[58].mxu1 }
 0x23d   : > { %v1045_v62 = vadd.f32 %v2291_v29, %v1044_v61  ;;  %v1697_v63 = vpop.f32.mrb[59].mxu1 }
 0x23f   : > { %1161 = vst.msk [vmem:[%s2298_s25 + $0x100] sm:$0xff] %vm1128_vm2, %v1045_v62 }
 0x240   : > { %v1049_v0 = vpop.f32.mrb[60].mxu1 }
 0x241   : > { %v1050_v1 = vadd.f32 %v2291_v29, %v1049_v0  ;;  %v1700_v2 = vpop.f32.mrb[61].mxu1 }
 0x243   : > { %1162 = vst.msk [vmem:[%s2298_s25 + $0x108] sm:$0xff] %vm1128_vm2, %v1050_v1 }
 0x244   : > { %v1054_v3 = vpop.f32.mrb[62].mxu1 }
 0x245   : > { %v1055_v4 = vadd.f32 %v2291_v29, %v1054_v3  ;;  %v1703_v5 = vpop.f32.mrb[63].mxu1 }
 0x247   : > { %1163 = vst.msk [vmem:[%s2298_s25 + $0x110] sm:$0xff] %vm1128_vm2, %v1055_v4 }
 0x248   : > { %v1059_v7 = vpop.f32.mrb[64].mxu1 }
 0x249   : > { %v1060_v8 = vadd.f32 %v2291_v29, %v1059_v7  ;;  %v1706_v9 = vpop.f32.mrb[65].mxu1 }
 0x24b   : > { %1164 = vst.msk [vmem:[%s2298_s25 + $0x118] sm:$0xff] %vm1128_vm2, %v1060_v8 }
 0x24c   : > { %v1064_v10 = vpop.f32.mrb[66].mxu1 }
 0x24d   : > { %v1065_v11 = vadd.f32 %v2291_v29, %v1064_v10  ;;  %v1709_v12 = vpop.f32.mrb[67].mxu1 }
 0x24f   : > { %1165 = vst.msk [vmem:[%s2298_s25 + $0x120] sm:$0xff] %vm1128_vm2, %v1065_v11 }
 0x250   : > { %v1069_v13 = vpop.f32.mrb[68].mxu1 }
 0x251   : > { %v1070_v14 = vadd.f32 %v2291_v29, %v1069_v13  ;;  %v1712_v15 = vpop.f32.mrb[69].mxu1 }
 0x253   : > { %1166 = vst.msk [vmem:[%s2298_s25 + $0x128] sm:$0xff] %vm1128_vm2, %v1070_v14 }
 0x254   : > { %v1074_v16 = vpop.f32.mrb[70].mxu1 }
 0x255   : > { %v1075_v17 = vadd.f32 %v2291_v29, %v1074_v16  ;;  %v1715_v19 = vpop.f32.mrb[71].mxu1 }
 0x257   : > { %1167 = vst.msk [vmem:[%s2298_s25 + $0x130] sm:$0xff] %vm1128_vm2, %v1075_v17 }
 0x258   : > { %v1079_v20 = vpop.f32.mrb[72].mxu1 }
 0x259   : > { %v1080_v21 = vadd.f32 %v2291_v29, %v1079_v20  ;;  %v1718_v22 = vpop.f32.mrb[73].mxu1 }
 0x25b   : > { %1168 = vst.msk [vmem:[%s2298_s25 + $0x138] sm:$0xff] %vm1128_vm2, %v1080_v21 }
 0x25c   : > { %v1084_v23 = vpop.f32.mrb[74].mxu1 }
 0x25d   : > { %v1085_v24 = vadd.f32 %v2291_v29, %v1084_v23  ;;  %v1721_v25 = vpop.f32.mrb[75].mxu1 }
 0x25f   : > { %1169 = vst.msk [vmem:[%s2298_s25 + $0x140] sm:$0xff] %vm1128_vm2, %v1085_v24 }
 0x260   : > { %v1089_v26 = vpop.f32.mrb[76].mxu1 }
 0x261   : > { %v1090_v27 = vadd.f32 %v2291_v29, %v1089_v26  ;;  %v1724_v28 = vpop.f32.mrb[77].mxu1 }
 0x263   : > { %1170 = vst.msk [vmem:[%s2298_s25 + $0x148] sm:$0xff] %vm1128_vm2, %v1090_v27 }
 0x264   : > { %v1094_v18 = vpop.f32.mrb[78].mxu1 }
 0x265   : > { %v1095_v6 = vadd.f32 %v2291_v29, %v1094_v18  ;;  %v1727_v30 = vpop.f32.mrb[79].mxu1 }
 0x267   : > { %1171 = vst.msk [vmem:[%s2298_s25 + $0x150] sm:$0xff] %vm1128_vm2, %v1095_v6 }
 0x268   : > { %v1099_v31 = vpop.f32.mrb[80].mxu1 }
 0x269   : > { %v1100_v32 = vadd.f32 %v2291_v29, %v1099_v31  ;;  %v1730_v33 = vpop.f32.mrb[81].mxu1 }
 0x26b   : > { %1172 = vst.msk [vmem:[%s2298_s25 + $0x158] sm:$0xff] %vm1128_vm2, %v1100_v32 }
 0x26c   : > { %v1104_v34 = vpop.f32.mrb[82].mxu1 }
 0x26d   : > { %v1105_v35 = vadd.f32 %v2291_v29, %v1104_v34  ;;  %v1733_v36 = vpop.f32.mrb[83].mxu1 }
 0x26f   : > { %1173 = vst.msk [vmem:[%s2298_s25 + $0x160] sm:$0xff] %vm1128_vm2, %v1105_v35 }
 0x270   : > { %v1109_v37 = vpop.f32.mrb[84].mxu1 }
 0x271   : > { %v1110_v38 = vadd.f32 %v2291_v29, %v1109_v37  ;;  %v1736_v39 = vpop.f32.mrb[85].mxu1 }
 0x273   : > { %1174 = vst.msk [vmem:[%s2298_s25 + $0x168] sm:$0xff] %vm1128_vm2, %v1110_v38 }
 0x274   : > { %v1114_v40 = vpop.f32.mrb[86].mxu1 }
 0x275   : > { %v1115_v41 = vadd.f32 %v2291_v29, %v1114_v40  ;;  %v1739_v42 = vpop.f32.mrb[87].mxu1 }
 0x277   : > { %1175 = vst.msk [vmem:[%s2298_s25 + $0x170] sm:$0xff] %vm1128_vm2, %v1115_v41 }
 0x278   : > { %v1119_v43 = vpop.f32.mrb[88].mxu1 }
 0x279   : > { %v1120_v44 = vadd.f32 %v2291_v29, %v1119_v43  ;;  %v1742_v45 = vpop.f32.mrb[89].mxu1 }
 0x27b   : > { %1176 = vst.msk [vmem:[%s2298_s25 + $0x178] sm:$0xff] %vm1128_vm2, %v1120_v44 }
 0x27c   : > { %v1124_v46 = vpop.f32.mrb[90].mxu1 }
 0x27d   : > { %v1125_v47 = vadd.f32 %v2291_v29, %v1124_v46  ;;  %v1745_v48 = vpop.f32.mrb[91].mxu1 }
 0x27f   : > { %1177 = vst.msk [vmem:[%s2298_s25 + $0x180] sm:$0xff] %vm1128_vm2, %v1125_v47 }
 0x280 PF: > { %s15_s18 = sadd.s32 1, %s1809_s18  }
 0x281   : > { %p12_p4 = scmp.ge.s32.totalorder %s15_s18, 4  }
 0x283   :  { %14 = sbr.rel (!%p12_p4) target bundleno = 1 (0x1), region = 70 }

</bundles_post_ra>
